<compile_context>
chip_gen: v6e
topology: v6e:2x2x1
jax: 0.10.0
libtpu: 0.0.40
codegen_flags: <defaults>
</compile_context>

<pallas_src>
import functools
import math

import jax
import jax.numpy as jnp
from jax.experimental import pallas as pl
from jax.experimental.pallas import tpu as pltpu

_LN_EPS = 1e-5


def _round_up(x, m):
    return ((x + m - 1) // m) * m


def _vmem_capacity_bytes():
    try:
        info = pltpu.get_tpu_info()
        cap = int(getattr(info, "vmem_capacity_bytes", 0))
        if cap > 0:
            return cap
    except Exception:
        pass
    return 64 * 1024 * 1024  # conservative fallback (v7x per-core VMEM)


def _layernorm_relu(y, gamma, beta):
    """Row-wise LayerNorm (two-pass variance, eps=1e-5) + ReLU, all in f32."""
    mean = jnp.mean(y, axis=-1, keepdims=True)
    centered = y - mean
    var = jnp.mean(centered * centered, axis=-1, keepdims=True)
    y_hat = centered * jax.lax.rsqrt(var + _LN_EPS)
    y_hat = y_hat * gamma + beta
    return jnp.maximum(y_hat, 0.0)


def _mlp_kernel_single(x_ref, w_ref, b_ref, g_ref, be_ref, o_ref):
    """One fused pass: full-K matmul + bias + LayerNorm + ReLU for one (bm, N) output tile."""
    y = jnp.dot(x_ref[...], w_ref[...], preferred_element_type=jnp.float32)
    y = y + b_ref[...].astype(jnp.float32)
    out = _layernorm_relu(y, g_ref[...].astype(jnp.float32), be_ref[...].astype(jnp.float32))
    # TODO(synk): nn.Dropout is stochastic in training mode; identity at inference.
    o_ref[...] = out.astype(o_ref.dtype)


def _mlp_kernel_ktiled(x_ref, w_ref, b_ref, g_ref, be_ref, o_ref, acc_ref, *,
                       nk, tk, k_valid, w_resident, mask_k):
    """K-tiled f32 accumulation; LayerNorm + ReLU epilogue on the last K step."""
    k = pl.program_id(1)

    x = x_ref[...]
    if mask_k:
        # Zero the out-of-range K columns (only the last K tile is partially valid).  For all
        # other tiles the predicate is all-true, so this is a cheap VPU select hidden under MXU.
        # W's matching rows are exact zeros (one-time host pad), so 0 * 0 == 0 — never NaN.
        col = jax.lax.broadcasted_iota(jnp.int32, x.shape, dimension=1) + k * tk
        x = jnp.where(col < k_valid, x, jnp.zeros_like(x))

    if w_resident:
        # Full W lives in VMEM (constant index_map -> fetched once); slice the k-th panel here.
        start = pl.multiple_of(k * tk, tk)
        w = w_ref[pl.ds(start, tk), :]
    else:
        w = w_ref[...]

    @pl.when(k == 0)
    def _init():
        # Fold the linear bias into the accumulator init (saves a separate add pass).
        acc_ref[...] = jnp.broadcast_to(b_ref[...].astype(jnp.float32), acc_ref.shape)

    # MXU hot path: native-dtype operands (bf16 stays bf16), f32 accumulation.
    acc_ref[...] += jnp.dot(x, w, preferred_element_type=jnp.float32)

    @pl.when(k == nk - 1)
    def _epilogue():
        out = _layernorm_relu(acc_ref[...], g_ref[...].astype(jnp.float32),
                              be_ref[...].astype(jnp.float32))
        # TODO(synk): nn.Dropout is stochastic in training mode; identity at inference.
        o_ref[...] = out.astype(o_ref.dtype)


def mlp_block(x, w, b, gamma, beta, *, bm=None, tk=None, w_resident=None):
    """Fused Linear + LayerNorm + ReLU (Dropout = identity at inference).

    x: (B, K); w: (K, N) (pre-transposed vs. torch's (N, K)); b/gamma/beta: (N,).
    bm / tk / w_resident override the auto tiling (mainly for tests).
    """
    B, K = x.shape
    Kw, N = w.shape
    assert K == Kw
    x_it = x.dtype.itemsize
    w_it = w.dtype.itemsize
    o_it = x.dtype.itemsize

    cap = _vmem_capacity_bytes()
    budget = int(cap * 0.80)            # planning budget (headroom below physical)
    vmem_limit = int(cap * 0.90)        # hard limit handed to Mosaic
    vec_bytes = 3 * 2 * max(N, 128) * 4
    slack = 2 * 1024 * 1024

    # ---------- M (batch) tiling ----------
    if bm is None:
        bm = 512 if cap >= 96 * 1024 * 1024 else 256   # v5e/v6e (128 MiB) vs v7x (64 MiB)
    if B <= bm:
        bm_eff = B                                     # full-dim block (no (8,128) issue)
    else:
        bm_eff = max(8, (bm // 8) * 8)
    if B > 256:
        # Guarantee >= 2 M tiles so the "parallel" batch axis can shard across TensorCores (v7x).
        bm_eff = min(bm_eff, _round_up(-(-B // 2), 8))
    m_tiles = pl.cdiv(B, bm_eff)

    b2, g2, be2 = b.reshape(1, N), gamma.reshape(1, N), beta.reshape(1, N)

    # ---------- Path A: single fused pass (full K per x tile, W resident in VMEM) ----------
    def single_k_usage(bm_):
        return (2 * bm_ * K * x_it + 2 * K * N * w_it + 2 * bm_ * N * o_it
                + 2 * bm_ * N * 4 + vec_bytes + slack)

    use_single = ((tk is None or tk >= K) and (w_resident is not False)
                  and single_k_usage(bm_eff) <= budget)

    if use_single:
        cost = pl.CostEstimate(
            flops=2 * B * K * N, transcendentals=B,
            bytes_accessed=B * K * x_it + K * N * w_it + B * N * o_it + 3 * N * 4)
        return pl.pallas_call(
            _mlp_kernel_single,
            out_shape=jax.ShapeDtypeStruct((B, N), x.dtype),
            grid_spec=pltpu.PrefetchScalarGridSpec(
                num_scalar_prefetch=0,
                grid=(m_tiles,),
                in_specs=[
                    pl.BlockSpec((bm_eff, K), lambda i: (i, 0)),   # x tile (ragged B handled by Pallas)
                    pl.BlockSpec((K, N), lambda i: (0, 0)),        # W resident: fetched once per call
                    pl.BlockSpec((1, N), lambda i: (0, 0)),        # bias
                    pl.BlockSpec((1, N), lambda i: (0, 0)),        # LN gamma
                    pl.BlockSpec((1, N), lambda i: (0, 0)),        # LN beta
                ],
                out_specs=pl.BlockSpec((bm_eff, N), lambda i: (i, 0)),
            ),
            compiler_params=pltpu.CompilerParams(
                dimension_semantics=("parallel",),
                vmem_limit_bytes=vmem_limit),
            cost_estimate=cost,
        )(x, w, b2, g2, be2)

    # ---------- Path B: K-tiled accumulation (W resident if it fits, else streamed) ----------
    if tk is None:
        tk = 1024 if cap < 96 * 1024 * 1024 else 512   # v7x: fewer K steps (less acc RMW traffic)
    tk_eff = max(128, (tk // 128) * 128)
    tk_eff = min(tk_eff, _round_up(K, 128))

    def ktiled_usage(bm_, tk_, resident):
        w_bytes = 2 * (_round_up(K, tk_) if resident else tk_) * N * w_it
        return (2 * bm_ * tk_ * x_it + w_bytes + 2 * bm_ * N * o_it
                + bm_ * N * 4 + 2 * bm_ * N * 4 + vec_bytes + slack)

    if w_resident is None:
        w_resident = ktiled_usage(bm_eff, tk_eff, True) <= budget
    if not w_resident:
        # Shrink tiles until the streamed-W working set fits the budget.
        while ktiled_usage(bm_eff, tk_eff, False) > budget and (tk_eff > 128 or bm_eff > 8):
            if tk_eff > 128:
                tk_eff = max(128, (tk_eff // 2 // 128) * 128)
            else:
                bm_eff = max(8, ((bm_eff // 2) // 8) * 8)
        m_tiles = pl.cdiv(B, bm_eff)

    K_pad = _round_up(K, tk_eff)
    nk = K_pad // tk_eff
    mask_k = (K_pad != K)
    # Tiny one-time zero-pad of W along K so out-of-range rows are exact zeros.  x itself is
    # never padded: its ragged K columns are masked in-kernel; its ragged B rows are simply
    # dropped by the partial trailing output block.
    w_in = w if not mask_k else jnp.pad(w, ((0, K_pad - K), (0, 0)))

    if w_resident:
        w_spec = pl.BlockSpec((K_pad, N), lambda i, k: (0, 0))     # fetched once, sliced in-kernel
        w_traffic = K_pad * N * w_it
    else:
        w_spec = pl.BlockSpec((tk_eff, N), lambda i, k: (k, 0))    # streamed once per M tile
        w_traffic = K_pad * N * w_it * m_tiles

    cost = pl.CostEstimate(
        flops=2 * B * K * N, transcendentals=B,
        bytes_accessed=B * K * x_it + w_traffic + B * N * o_it + 3 * N * 4)

    kernel = functools.partial(_mlp_kernel_ktiled, nk=nk, tk=tk_eff, k_valid=K,
                               w_resident=w_resident, mask_k=mask_k)

    return pl.pallas_call(
        kernel,
        out_shape=jax.ShapeDtypeStruct((B, N), x.dtype),
        grid_spec=pltpu.PrefetchScalarGridSpec(
            num_scalar_prefetch=0,
            grid=(m_tiles, nk),                                    # reduction axis last
            in_specs=[
                pl.BlockSpec((bm_eff, tk_eff), lambda i, k: (i, k)),   # x tile
                w_spec,                                                # W
                pl.BlockSpec((1, N), lambda i, k: (0, 0)),             # bias
                pl.BlockSpec((1, N), lambda i, k: (0, 0)),             # LN gamma
                pl.BlockSpec((1, N), lambda i, k: (0, 0)),             # LN beta
            ],
            out_specs=pl.BlockSpec((bm_eff, N), lambda i, k: (i, 0)),
            scratch_shapes=[pltpu.VMEM((bm_eff, N), jnp.float32)],     # f32 accumulator
        ),
        compiler_params=pltpu.CompilerParams(
            dimension_semantics=("parallel", "arbitrary"),
            vmem_limit_bytes=vmem_limit),
        cost_estimate=cost,
    )(x, w_in, b2, g2, be2)


def _reference(x, w, b, gamma, beta):
    y = x @ w + b
    mean = jnp.mean(y, axis=-1, keepdims=True)
    var = jnp.mean((y - mean) ** 2, axis=-1, keepdims=True)
    y = (y - mean) / jnp.sqrt(var + _LN_EPS)
    y = y * gamma + beta
    return jnp.maximum(y, 0.0)


if __name__ == "__main__":
    key = jax.random.PRNGKey(0)

    # --- Test 1: module-sized shapes -> single fused pass (Path A, resident W). ---
    batch, input_dim, output_dim = 8, 32, 64
    k_x, k_w, k_b = jax.random.split(key, 3)
    x = jax.random.normal(k_x, (batch, input_dim), dtype=jnp.float32)
    bound = 1.0 / math.sqrt(input_dim)
    w = jax.random.uniform(k_w, (input_dim, output_dim), jnp.float32, -bound, bound)
    b = jax.random.uniform(k_b, (output_dim,), jnp.float32, -bound, bound)
    gamma = jnp.ones((output_dim,), jnp.float32)   # nn.LayerNorm default affine init
    beta = jnp.zeros((output_dim,), jnp.float32)

    out = jax.block_until_ready(mlp_block(x, w, b, gamma, beta))
    ref = _reference(x, w, b, gamma, beta)
    assert out.shape == (batch, output_dim)
    assert jnp.allclose(out, ref, atol=1e-4, rtol=1e-4)

    # --- Test 2: ragged B and K, K-tiled path with RESIDENT W + in-kernel K mask. ---
    B2, K2, N2 = 130, 300, 128
    k1, k2, k3, k4, k5 = jax.random.split(jax.random.PRNGKey(1), 5)
    x2 = jax.random.normal(k1, (B2, K2), dtype=jnp.float32)
    bound2 = 1.0 / math.sqrt(K2)
    w2 = jax.random.uniform(k2, (K2, N2), jnp.float32, -bound2, bound2)
    b2 = jax.random.uniform(k3, (N2,), jnp.float32, -bound2, bound2)
    g2 = 1.0 + 0.1 * jax.random.normal(k4, (N2,), jnp.float32)
    be2 = 0.1 * jax.random.normal(k5, (N2,), jnp.float32)
    ref2 = _reference(x2, w2, b2, g2, be2)

    out2 = jax.block_until_ready(mlp_block(x2, w2, b2, g2, be2, bm=64, tk=128))
    assert out2.shape == (B2, N2)
    assert jnp.allclose(out2, ref2, atol=1e-4, rtol=1e-4)

    # --- Test 2b: same shapes, forced STREAMED-W K-tiled path. ---
    out2b = jax.block_until_ready(
        mlp_block(x2, w2, b2, g2, be2, bm=64, tk=128, w_resident=False))
    assert jnp.allclose(out2b, ref2, atol=1e-4, rtol=1e-4)

    # --- Test 3: bf16 operands feed the MXU directly (f32 accumulate in-kernel). ---
    xb, wb, bb = x.astype(jnp.bfloat16), w.astype(jnp.bfloat16), b.astype(jnp.bfloat16)
    gb, beb = gamma.astype(jnp.bfloat16), beta.astype(jnp.bfloat16)
    out3 = jax.block_until_ready(mlp_block(xb, wb, bb, gb, beb))
    ref3 = _reference(xb.astype(jnp.float32), wb.astype(jnp.float32),
                      bb.astype(jnp.float32), gb.astype(jnp.float32),
                      beb.astype(jnp.float32))
    assert jnp.allclose(out3.astype(jnp.float32), ref3, atol=5e-2, rtol=5e-2)

    # --- Test 4: B > 256 -> >= 2 M tiles (megacore split) with a partial trailing block. ---
    B4 = 300
    x4 = jax.random.normal(jax.random.PRNGKey(2), (B4, input_dim), dtype=jnp.float32)
    out4 = jax.block_until_ready(mlp_block(x4, w, b, gamma, beta))
    ref4 = _reference(x4, w, b, gamma, beta)
    assert out4.shape == (B4, output_dim)
    assert jnp.allclose(out4, ref4, atol=1e-4, rtol=1e-4)

    print("KERNEL_OK")
</pallas_src>

<mosaic_0001>
module attributes {stable_mosaic.version = 11 : i64} {
  func.func @_mlp_kernel_single(%arg0: i32, %arg1: memref<8x32xf32, #tpu.memory_space<vmem>>, %arg2: memref<32x64xf32, #tpu.memory_space<vmem>>, %arg3: memref<1x64xf32, #tpu.memory_space<vmem>>, %arg4: memref<1x64xf32, #tpu.memory_space<vmem>>, %arg5: memref<1x64xf32, #tpu.memory_space<vmem>>, %arg6: memref<8x64xf32, #tpu.memory_space<vmem>>) attributes {dimension_semantics = [#tpu.dimension_semantics<parallel>], iteration_bounds = array<i64: 1>, scalar_prefetch = 0 : i64, scratch_operands = 0 : i64, tpu.core_type = #tpu.core_type<tc>, window_params = [{transform_indices = @transform_0, window_bounds = array<i64: 8, 32>}, {pipeline_mode = #tpu.pipeline_mode<synchronous>, transform_indices = @transform_1, window_bounds = array<i64: 32, 64>}, {pipeline_mode = #tpu.pipeline_mode<synchronous>, transform_indices = @transform_2, window_bounds = array<i64: 1, 64>}, {pipeline_mode = #tpu.pipeline_mode<synchronous>, transform_indices = @transform_3, window_bounds = array<i64: 1, 64>}, {pipeline_mode = #tpu.pipeline_mode<synchronous>, transform_indices = @transform_4, window_bounds = array<i64: 1, 64>}, {transform_indices = @transform_5, window_bounds = array<i64: 8, 64>}]} {
    %c0 = arith.constant 0 : index
    %c0_0 = arith.constant 0 : index
    %0 = vector.load %arg1[%c0, %c0_0] : memref<8x32xf32, #tpu.memory_space<vmem>>, vector<8x32xf32>
    %c0_1 = arith.constant 0 : index
    %c0_2 = arith.constant 0 : index
    %1 = vector.load %arg2[%c0_1, %c0_2] : memref<32x64xf32, #tpu.memory_space<vmem>>, vector<32x64xf32>
    %cst = arith.constant dense<0.000000e+00> : vector<8x64xf32>
    %2 = tpu.matmul %0, %1, %cst {dimension_numbers = #tpu.dot_dimension_numbers<[1], [0], [0], [1], [0, 0, 1, 1], [], []>} : vector<8x32xf32>, vector<32x64xf32>, vector<8x64xf32> -> vector<8x64xf32>
    %c0_3 = arith.constant 0 : index
    %c0_4 = arith.constant 0 : index
    %3 = vector.load %arg3[%c0_3, %c0_4] : memref<1x64xf32, #tpu.memory_space<vmem>>, vector<1x64xf32>
    %4 = vector.broadcast %3 : vector<1x64xf32> to vector<8x64xf32>
    %5 = arith.addf %2, %4 : vector<8x64xf32>
    %c0_5 = arith.constant 0 : index
    %c0_6 = arith.constant 0 : index
    %6 = vector.load %arg4[%c0_5, %c0_6] : memref<1x64xf32, #tpu.memory_space<vmem>>, vector<1x64xf32>
    %c0_7 = arith.constant 0 : index
    %c0_8 = arith.constant 0 : index
    %7 = vector.load %arg5[%c0_7, %c0_8] : memref<1x64xf32, #tpu.memory_space<vmem>>, vector<1x64xf32>
    %cst_9 = arith.constant dense<0.000000e+00> : vector<8xf32>
    %8 = vector.multi_reduction <add>, %5, %cst_9 [1] : vector<8x64xf32> to vector<8xf32>
    %9 = vector.shape_cast %8 : vector<8xf32> to vector<8x1xf32>
    %cst_10 = arith.constant 6.400000e+01 : f32
    %10 = vector.broadcast %cst_10 : f32 to vector<8x1xf32>
    %11 = arith.divf %9, %10 : vector<8x1xf32>
    %12 = vector.broadcast %11 : vector<8x1xf32> to vector<8x64xf32>
    %13 = arith.subf %5, %12 : vector<8x64xf32>
    %14 = arith.mulf %13, %13 : vector<8x64xf32>
    %cst_11 = arith.constant dense<0.000000e+00> : vector<8xf32>
    %15 = vector.multi_reduction <add>, %14, %cst_11 [1] : vector<8x64xf32> to vector<8xf32>
    %16 = vector.shape_cast %15 : vector<8xf32> to vector<8x1xf32>
    %cst_12 = arith.constant 6.400000e+01 : f32
    %17 = vector.broadcast %cst_12 : f32 to vector<8x1xf32>
    %18 = arith.divf %16, %17 : vector<8x1xf32>
    %cst_13 = arith.constant 9.99999974E-6 : f32
    %19 = vector.broadcast %cst_13 : f32 to vector<8x1xf32>
    %20 = arith.addf %18, %19 : vector<8x1xf32>
    %21 = math.rsqrt %20 : vector<8x1xf32>
    %22 = vector.broadcast %21 : vector<8x1xf32> to vector<8x64xf32>
    %23 = arith.mulf %13, %22 : vector<8x64xf32>
    %24 = vector.broadcast %6 : vector<1x64xf32> to vector<8x64xf32>
    %25 = arith.mulf %23, %24 : vector<8x64xf32>
    %26 = vector.broadcast %7 : vector<1x64xf32> to vector<8x64xf32>
    %27 = arith.addf %25, %26 : vector<8x64xf32>
    %cst_14 = arith.constant 0.000000e+00 : f32
    %28 = vector.broadcast %cst_14 : f32 to vector<8x64xf32>
    %29 = arith.maximumf %27, %28 : vector<8x64xf32>
    %c0_15 = arith.constant 0 : index
    %c0_16 = arith.constant 0 : index
    %30 = vector.load %arg6[%c0_15, %c0_16] : memref<8x64xf32, #tpu.memory_space<vmem>>, vector<8x64xf32>
    tpu.vector_store %arg6[%c0_15, %c0_16], %29 {strides = array<i32>} : memref<8x64xf32, #tpu.memory_space<vmem>>, vector<8x64xf32>,
    return
  }
  func.func @transform_0(%arg0: i32) -> (i32, i32) {
    %c0_i32 = arith.constant 0 : i32
    %c0_i32_0 = arith.constant 0 : i32
    return %arg0, %c0_i32 : i32, i32
  }
  func.func @transform_1(%arg0: i32) -> (i32, i32) {
    %c0_i32 = arith.constant 0 : i32
    %c0_i32_0 = arith.constant 0 : i32
    %c0_i32_1 = arith.constant 0 : i32
    return %c0_i32, %c0_i32_0 : i32, i32
  }
  func.func @transform_2(%arg0: i32) -> (i32, i32) {
    %c0_i32 = arith.constant 0 : i32
    %c0_i32_0 = arith.constant 0 : i32
    %c0_i32_1 = arith.constant 0 : i32
    return %c0_i32, %c0_i32_0 : i32, i32
  }
  func.func @transform_3(%arg0: i32) -> (i32, i32) {
    %c0_i32 = arith.constant 0 : i32
    %c0_i32_0 = arith.constant 0 : i32
    %c0_i32_1 = arith.constant 0 : i32
    return %c0_i32, %c0_i32_0 : i32, i32
  }
  func.func @transform_4(%arg0: i32) -> (i32, i32) {
    %c0_i32 = arith.constant 0 : i32
    %c0_i32_0 = arith.constant 0 : i32
    %c0_i32_1 = arith.constant 0 : i32
    return %c0_i32, %c0_i32_0 : i32, i32
  }
  func.func @transform_5(%arg0: i32) -> (i32, i32) {
    %c0_i32 = arith.constant 0 : i32
    %c0_i32_0 = arith.constant 0 : i32
    return %arg0, %c0_i32 : i32, i32
  }
}

</mosaic_0001>

<bundles_post_ra>
// kernel: tpu_custom_call.1
= control target key start
LH: loop header
LB: loop body
LE: loop exit
PB: predicated region body
PF: predicated region fallthrough
CT: control target
= control target key end

     0   :  { %10 = vsyncpa [#allocation3], 0  ;;  %s335_s0 = inlined_call_operand.hbm [shape: f32[8,32], index: 0, kind: input, shape index: {}]   ;;  %s336_s1 = inlined_call_operand.hbm [shape: f32[32,64], index: 1, kind: input, shape index: {}]   ;;  %s337_s2 = inlined_call_operand.vmem [shape: f32[1,64], index: 2, kind: input, shape index: {}]   ;;  %s338_s3 = inlined_call_operand.vmem [shape: f32[1,64], index: 3, kind: input, shape index: {}]   ;;  %s339_s4 = inlined_call_operand.vmem [shape: f32[1,64], index: 4, kind: input, shape index: {}]   ;;  %s340_s5 = inlined_call_operand.hbm [shape: f32[8,64], index: 5, kind: output, shape index: {}]  }
   0x1   :  { %11 = vsyncpa [#allocation6], 0 }
   0x2   :  { %12 = vsyncpa [#allocation4], 0  ;;  %s277_s18 = smov [#allocation2]   ;;  %s278_s20 = smov [#allocation5]  }
   0x3   :  { %s19_s19 = sshll.u32 %s277_s18, 4  ;;  %s28_s21 = sshll.u32 %s278_s20, 4  ;;  %s20_s19 = int_to_ptr.vmem [resolvable:$true] %s19_s19  ;;  %s29_s21 = int_to_ptr.vmem [resolvable:$true] %s28_s21 }
   0x4   :  { %s219_s22 = scalar_lea.vmem %s20_s19, 128  ;;  %p224_p1 = scmp.lt.s32.totalorder %s20_s19, %s20_s19 }
   0x5   :  { %p220_p0 = scmp.ne.s32.totalorder %s20_s19, %s219_s22  ;;  %p225_p2 = scmp.lt.s32.totalorder %s219_s22, %s219_s22 }
   0x7   :  { %p226_p3 = por %p225_p2, %p224_p1 }
   0x9   :  { %p227_p4 = pnand %p226_p3, %p220_p0 }
   0xb   :  { %230 = shalt.err (!%p227_p4)
}
   0xc   :  { %22 = dma.hbm_to_vmem [thread:$0]  %s335_s0, 128, %s20_s19, [#allocation3]  }
   0xd   :  { %s239_s25 = scalar_lea.vmem %s29_s21, 512  ;;  %p244_p6 = scmp.lt.s32.totalorder %s29_s21, %s29_s21 }
   0xe   :  { %p240_p5 = scmp.ne.s32.totalorder %s29_s21, %s239_s25  ;;  %p245_p7 = scmp.lt.s32.totalorder %s239_s25, %s239_s25 }
  0x10   :  { %p246_p8 = por %p245_p7, %p244_p6 }
  0x12   :  { %p247_p9 = pnand %p246_p8, %p240_p5 }
  0x14   :  { %250 = shalt.err (!%p247_p9)
}
  0x15   :  { %s279_s26 = smov 128   ;;  %s280_s27 = smov 8  }
  0x16   :  { %34 = dma.hbm_to_vmem [thread:$0]  %s336_s1, 512, %s29_s21, [#allocation6], %s279_s26, %s279_s26, %s280_s27  }
  0x17   :  { %271 = dma.done.wait [#allocation3], 128  }
  0x18   :  { %272 = vsyncadd [#allocation3], 4294967168 }
  0x19   :  { %273 = dma.done.wait [#allocation6], 512  }
  0x1a   :  { %274 = vsyncadd [#allocation6], 4294966784  ;;  %v281_v0 = vmov 0.0   ;;  %vm282_vm0 = vmmov 0   ;;  %v51_v1 = vld [vmem:[#allocation5 + $0x18] sm:$0xff]  ;;  %v50_v2 = vld [vmem:[#allocation5 + $0x10] sm:$0xff] }
  0x1b   :  { %191 = vmatprep.subr.mxu0 %v281_v0  ;;  %199 = vmatprep.mubr.msk.f32.mxu0 %vm282_vm0, %v281_v0  ;;  %v49_v3 = vld [vmem:[#allocation5 + $0x8] sm:$0xff]  ;;  %v48_v4 = vld [vmem:[#allocation5] sm:$0xff]  ;;  %v47_v5 = vld [vmem:[#allocation2] sm:$0xff]  ;;  %vm59_vm1 = vcmask 261120   ;;  %vm135_vm2 = vcmask 523264   ;;  %s283_s8 = smov [#allocation7]  }
  0x1c   :  { %192 = vmatpush3.msra.mxu0 %v51_v1  ;;  %v182_v6 = vld [vmem:[%s337_s2] ss:$0 sm:$0xff]  ;;  %s172_s9 = sshll.u32 %s283_s8, 4  ;;  %s173_s9 = int_to_ptr.vmem [resolvable:$true] %s172_s9 }
  0x1d   :  { %193 = vmatprep.subr.mxu0 %v281_v0  ;;  %v184_v20 = vld [vmem:[%s338_s3] ss:$0 sm:$0xff]  ;;  %s251_s10 = scalar_lea.vmem %s173_s9, 128  ;;  %p256_p11 = scmp.lt.s32.totalorder %s173_s9, %s173_s9 }
  0x1e   :  { %194 = vmatpush3.msra.mxu0 %v50_v2  ;;  %v185_v22 = vld [vmem:[%s339_s4] ss:$0 sm:$0xff]  ;;  %p252_p10 = scmp.ne.s32.totalorder %s173_s9, %s251_s10  ;;  %p257_p12 = scmp.lt.s32.totalorder %s251_s10, %s251_s10 }
  0x1f   :  { %195 = vmatprep.subr.mxu0 %v281_v0 }
  0x20   :  { %196 = vmatpush3.msra.mxu0 %v49_v3  ;;  %p258_p13 = por %p257_p12, %p256_p11 }
  0x21   :  { %197 = vmatprep.subr.mxu0 %v281_v0 }
  0x22   :  { %198 = vmatpush3.msra.mxu0 %v48_v4  ;;  %p259_p0 = pnand %p258_p13, %p252_p10 }
  0x23   :  { %200 = vmatmul.mubr.msk.f32.vlgmr.msra.gmra.mxu0 %vm59_vm1, %v47_v5 }
  0xe3   :  { %v129_v7 = vpop.f32.mrf.mxu0 }
  0xe4   :  { %v130_v8 = vadd.f32 %v182_v6, %v129_v7 }
  0xe5   :  { %v201_v9 = vpop.f32.mrf.mxu0 }
  0xe6   :  { %v136_v10 = vsel %vm135_vm2, %v130_v8, 0.0 }
  0xe7   :  { %137 = vadd.xlane.f32.xlu0 %v136_v10 }
 0x170   :  { %v138_v11 = vpop.xlane.xlu0 %137 }
 0x171   :  { %v140_v12 = vmul.f32 0.015625, %v138_v11 }
 0x173   :  { %v141_v13 = vsub.f32 %v130_v8, %v140_v12 }
 0x175   :  { %v142_v14 = vmul.f32 %v141_v13, %v141_v13 }
 0x177   :  { %v143_v15 = vsel %vm135_vm2, %v142_v14, 0.0 }
 0x178   :  { %144 = vadd.xlane.f32.xlu0 %v143_v15 }
 0x201   :  { %v145_v16 = vpop.xlane.xlu0 %144 }
 0x202   :  { %v146_v17 = vmul.f32 0.015625, %v145_v16 }
 0x204   :  { %v147_v18 = vadd.f32 1e-05, %v146_v17 }
 0x206   :  { %209 = vrsqrt.f32 %v147_v18 }
 0x213   :  { %v210_v19 = vpop.eup %209 }
 0x214   :  { %v149_v21 = vmul.f32 %v210_v19, %v141_v13 }
 0x216   :  { %v156_v23 = vmul.f32 %v184_v20, %v149_v21 }
 0x218   :  { %v163_v24 = vadd.f32 %v185_v22, %v156_v23 }
 0x21a   :  { %v164_v25 = vmax.f32 %v163_v24, 0.0 }
 0x21c   :  { %165 = vst.msk [vmem:[#allocation7] sm:$0xff] %vm135_vm2, %v164_v25 }
 0x21d   :  { %262 = shalt.err (!%p259_p0)
}
 0x21e   :  { %175 = dma.vmem_to_hbm [thread:$0]  %s173_s9, 128, %s340_s5, [#allocation4]  }
 0x21f   :  { %275 = dma.done.wait [#allocation4], 128  }
 0x220   :  { %276 = vsyncadd [#allocation4], 4294967168 }
 0x221   :  { %179 = vsyncpa [#allocation3], 1 }
 0x222   :  { %180 = vsyncpa [#allocation6], 1 }
 0x223   :  { %181 = vsyncpa [#allocation4], 1 }

</bundles_post_ra>
